<compile_context>
chip_gen: v6e
topology: v6e:2x2x1
jax: 0.10.0
libtpu: 0.0.40
codegen_flags: <defaults>
</compile_context>

<pallas_src>
import jax
import jax.numpy as jnp
from jax.experimental import pallas as pl
from jax.experimental.pallas import tpu as pltpu


_MiB = 1 << 20
_MIN_PALLAS_BYTES = 8 << 10      # below this, launch overhead dominates -> XLA slice
_MIN_CHUNK_BYTES = 1 * _MiB      # keep each DMA >= ~1 MiB
_MULTI_CHUNK_BYTES = 4 * _MiB    # start multi-chunking above this
_CORE_SPLIT_BYTES = 8 * _MiB     # split across TensorCores above this


def _sublane_rows(dtype) -> int:
    """Rows per sublane tile for this dtype (8 for 32-bit, 16 for bf16, 32 for int8)."""
    itemsize = jnp.dtype(dtype).itemsize
    return max(8, 32 // max(1, itemsize))


def _build_chunks(t: int, n_chunks: int, sublane: int):
    """Static (row_start, row_size) chunks whose boundaries are sublane-tile aligned."""
    rows = pl.cdiv(t, n_chunks)
    rows = pl.cdiv(rows, sublane) * sublane      # tile-aligned chunk size
    chunks, start = [], 0
    while start < t:
        size = min(rows, t - start)
        chunks.append((start, size))
        start += size
    return tuple(chunks)


def _make_dma_slice_copy_kernel(assignments, n_programs):
    """Kernel factory.

    `assignments[core]` is a static tuple of (sem_idx, row_start, row_size)
    describing the HBM->HBM row-range copies that grid program `core` issues.
    """

    def _issue(emb_ref, out_ref, sem, assigned):
        # Start all DMAs for this core, then wait for all.  Row ranges are
        # disjoint and each chunk has its own semaphore -> race-free.
        copies = []
        for sem_idx, start, size in assigned:
            cp = pltpu.make_async_copy(
                emb_ref.at[pl.ds(start, size), :],
                out_ref.at[pl.ds(start, size), :],
                sem.at[sem_idx],
            )
            cp.start()
            copies.append(cp)
        for cp in copies:
            cp.wait()

    def kernel(emb_ref, out_ref, sem):
        # emb_ref / out_ref are raw HBM refs (memory_space=pl.ANY).
        if n_programs == 1:
            _issue(emb_ref, out_ref, sem, assignments[0])
        else:
            pid = pl.program_id(0)
            for core, assigned in enumerate(assignments):
                if not assigned:
                    continue

                @pl.when(pid == core)
                def _(assigned=assigned):
                    _issue(emb_ref, out_ref, sem, assigned)

    return kernel


def position_embedding_forward(emb: jax.Array, t: int, *,
                               n_chunks: int | None = None,
                               n_core_splits: int | None = None) -> jax.Array:
    """Return emb[:t, :].  Large slices go through a direct HBM->HBM DMA kernel."""
    lmax, embed_dim = emb.shape
    t = int(t)
    if t < 0:
        # TODO(synk): negative slice lengths (PyTorch emb[:-k]) not supported.
        raise ValueError(f"t must be >= 0, got {t}")
    t = min(t, lmax)  # PyTorch emb[:t] silently caps at lmax.

    itemsize = jnp.dtype(emb.dtype).itemsize
    total_bytes = t * embed_dim * itemsize

    # ---- Short-circuits: skip the custom call when it can't pay for itself ----
    if t == 0:
        return emb[:0, :]
    if t == lmax:
        return emb
    if embed_dim < 128 or total_bytes < _MIN_PALLAS_BYTES:
        # Narrow last dim (< one lane tile) would pay a lane-padding tax on a
        # 2-D DMA; tiny slices are pure launch overhead.  A plain XLA slice
        # fuses into the consumer for free.
        return emb[:t, :]

    # ---- DMA chunking heuristics (size-scaled, >= 1 MiB per chunk) ----
    if n_chunks is None:
        if total_bytes < _MULTI_CHUNK_BYTES:
            n_chunks = 1
        elif total_bytes < 64 * _MiB:
            n_chunks = 4
        else:
            n_chunks = 8
        n_chunks = max(1, min(n_chunks, max(1, total_bytes // _MIN_CHUNK_BYTES)))
    if n_core_splits is None:
        n_core_splits = 2 if total_bytes >= _CORE_SPLIT_BYTES else 1
    n_chunks = max(int(n_chunks), int(n_core_splits))

    sublane = _sublane_rows(emb.dtype)
    chunks = _build_chunks(t, n_chunks, sublane)
    n_programs = min(int(n_core_splits), len(chunks))

    # Round-robin chunk -> core assignment (chunks are ~equal-sized).
    assignments = tuple(
        tuple((i, s, z) for i, (s, z) in enumerate(chunks) if i % n_programs == core)
        for core in range(n_programs)
    )

    return pl.pallas_call(
        _make_dma_slice_copy_kernel(assignments, n_programs),
        out_shape=jax.ShapeDtypeStruct((t, embed_dim), emb.dtype),
        grid=(n_programs,),
        # Leave both operands in HBM; the kernel DMAs directly between them.
        in_specs=[pl.BlockSpec(memory_space=pl.ANY)],
        out_specs=pl.BlockSpec(memory_space=pl.ANY),
        scratch_shapes=[pltpu.SemaphoreType.DMA((len(chunks),))],
        compiler_params=pltpu.CompilerParams(
            dimension_semantics=("parallel",)),   # shards grid across TCs on v7x
        cost_estimate=pl.CostEstimate(
            flops=0, transcendentals=0, bytes_accessed=2 * total_bytes),
    )(emb)


class PositionEmbedding:
    """JAX/Pallas port of the PyTorch PositionEmbedding module."""

    def __init__(self, lmax: int, embed_dim: int, key=None, dtype=jnp.float32):
        self.lmax = lmax
        self.embed_dim = embed_dim
        if key is None:
            # Matches nn.Parameter(torch.zeros(lmax, embed_dim))
            self.emb = jnp.zeros((lmax, embed_dim), dtype=dtype)
        else:
            # Deterministic non-trivial init for testing.
            self.emb = jax.random.normal(key, (lmax, embed_dim), dtype=dtype)

    def __call__(self, t: int) -> jax.Array:
        return position_embedding_forward(self.emb, t)


if __name__ == "__main__":
    key = jax.random.PRNGKey(0)
    k1, k2 = jax.random.split(key)

    # Case 1: ragged t through the Pallas DMA path (single chunk, grid=(1,)).
    lmax, embed_dim = 64, 128
    m1 = PositionEmbedding(lmax, embed_dim, key=k1)
    t = 41
    out = jax.block_until_ready(m1(t))
    ref = m1.emb[:t, :]
    assert out.shape == (t, embed_dim), out.shape
    assert out.dtype == m1.emb.dtype
    assert jnp.array_equal(out, ref), "Pallas slice-copy mismatch (t=41)"

    # Case 2: explicitly exercise the multi-chunk + 2-way core-split code path
    # (tile-aligned chunks, pl.when-gated DMAs per grid program) on small data.
    out_mc = jax.block_until_ready(
        position_embedding_forward(m1.emb, t, n_chunks=4, n_core_splits=2))
    assert jnp.array_equal(out_mc, ref), "Pallas multi-chunk/core-split mismatch"

    # Case 3: t == lmax short-circuit (no kernel launch, returns the table).
    out_full = jax.block_until_ready(m1(lmax))
    assert jnp.array_equal(out_full, m1.emb)

    # Case 4: narrow embed_dim / tiny slice falls back to a plain XLA slice.
    m_small = PositionEmbedding(16, 32, key=k2)
    out_small = jax.block_until_ready(m_small(5))
    assert out_small.shape == (5, 32)
    assert jnp.array_equal(out_small, m_small.emb[:5, :])

    # Case 5: t == 0 parity with PyTorch (empty tensor, no error).
    out_empty = jax.block_until_ready(m_small(0))
    assert out_empty.shape == (0, 32)

    print("KERNEL_OK")
</pallas_src>

<mosaic_0001>
module attributes {stable_mosaic.version = 11 : i64} {
  func.func @kernel(%arg0: i32, %arg1: memref<64x128xf32, #tpu.memory_space<any>>, %arg2: memref<41x128xf32, #tpu.memory_space<any>>, %arg3: memref<1x!tpu.dma_semaphore, #tpu.memory_space<semaphore_mem>>) attributes {dimension_semantics = [#tpu.dimension_semantics<parallel>], iteration_bounds = array<i64: 1>, scalar_prefetch = 0 : i64, scratch_operands = 1 : i64, tpu.core_type = #tpu.core_type<tc>, window_params = [{}, {}]} {
    %c0_i32 = arith.constant 0 : i32
    %c0_i32_0 = arith.constant 0 : i32
    %c0_i32_1 = arith.constant 0 : i32
    %0 = tpu.memref_slice %arg1[%c0_i32_0, %c0_i32_1] : memref<64x128xf32, #tpu.memory_space<any>> -> memref<41x128xf32, #tpu.memory_space<any>>
    %c0_i32_2 = arith.constant 0 : i32
    %c0_i32_3 = arith.constant 0 : i32
    %1 = tpu.memref_slice %arg2[%c0_i32_2, %c0_i32_3] : memref<41x128xf32, #tpu.memory_space<any>> -> memref<41x128xf32, #tpu.memory_space<any>>
    %2 = tpu.memref_slice %arg3[%c0_i32] : memref<1x!tpu.dma_semaphore, #tpu.memory_space<semaphore_mem>> -> memref<1x!tpu.dma_semaphore, #tpu.memory_space<semaphore_mem>>
    %3 = tpu.memref_squeeze %2 : memref<1x!tpu.dma_semaphore, #tpu.memory_space<semaphore_mem>> -> memref<!tpu.dma_semaphore, #tpu.memory_space<semaphore_mem>>
    tpu.enqueue_dma source(%0 : memref<41x128xf32, #tpu.memory_space<any>>) target(%1 : memref<41x128xf32, #tpu.memory_space<any>>) target_semaphore(%3 : memref<!tpu.dma_semaphore, #tpu.memory_space<semaphore_mem>>)
    %c0_i32_4 = arith.constant 0 : i32
    %c0_i32_5 = arith.constant 0 : i32
    %c0_i32_6 = arith.constant 0 : i32
    %4 = tpu.memref_slice %arg1[%c0_i32_5, %c0_i32_6] : memref<64x128xf32, #tpu.memory_space<any>> -> memref<41x128xf32, #tpu.memory_space<any>>
    %c0_i32_7 = arith.constant 0 : i32
    %c0_i32_8 = arith.constant 0 : i32
    %5 = tpu.memref_slice %arg2[%c0_i32_7, %c0_i32_8] : memref<41x128xf32, #tpu.memory_space<any>> -> memref<41x128xf32, #tpu.memory_space<any>>
    %6 = tpu.memref_slice %arg3[%c0_i32_4] : memref<1x!tpu.dma_semaphore, #tpu.memory_space<semaphore_mem>> -> memref<1x!tpu.dma_semaphore, #tpu.memory_space<semaphore_mem>>
    %7 = tpu.memref_squeeze %6 : memref<1x!tpu.dma_semaphore, #tpu.memory_space<semaphore_mem>> -> memref<!tpu.dma_semaphore, #tpu.memory_space<semaphore_mem>>
    tpu.wait_dma2 semaphore(%7 : memref<!tpu.dma_semaphore, #tpu.memory_space<semaphore_mem>>) src(%4 : memref<41x128xf32, #tpu.memory_space<any>>) dst(%5 : memref<41x128xf32, #tpu.memory_space<any>>)
    return
  }
}

</mosaic_0001>

<bundles_post_ra>
// kernel: tpu_custom_call.1
= control target key start
LH: loop header
LB: loop body
LE: loop exit
PB: predicated region body
PF: predicated region fallthrough
CT: control target
= control target key end

     0   :  { %s28_s6 = smov [#allocation2]   ;;  %s29_s7 = smov 131072   ;;  %s47_s0 = inlined_call_operand.hbm [shape: f32[64,128], index: 0, kind: input, shape index: {}]   ;;  %s48_s1 = inlined_call_operand.hbm [shape: f32[41,128], index: 1, kind: output, shape index: {}]  }
   0x1   :  { %s30_s8 = smov 0  }
   0x2   :  { %12 = dma.general %s47_s0, 656, %s48_s1, %s28_s6, %s29_s7, [#allocation4], %s30_s8, 0  }
   0x3   :  { %26 = dma.done.wait [#allocation2], 656 }
   0x4   :  { %27 = vsyncadd [#allocation2], 4294966640 }
   0x5   :  { %16 = vsyncmov [#allocation2] }
   0x8   :  { %s17_s13 = vpop.sfrf %16 }
   0x9   :  { %p22_p0 = scmp.ne.s32.totalorder %s17_s13, 0 }
   0xb   :  { %21 = shalt.err (%p22_p0)  }

</bundles_post_ra>
